<compile_context>
chip_gen: v5e
topology: v5e:2x2
jax: 0.10.0
libtpu: 0.0.40
codegen_flags: <defaults>
</compile_context>

<pallas_src>
import jax
import jax.numpy as jnp
from jax import lax
from jax.experimental import pallas as pl
from jax.experimental.pallas import tpu as pltpu


def _round_up(x, m):
    return (x + m - 1) // m * m


def _ffn_kernel(x_ref, w1_ref, b1_ref, w2_ref, b2_ref, o_ref, acc_ref):
    # x_ref:  (TM, dim_p)      w1_ref: (TH, dim_p)   b1_ref: (1, TH)
    # w2_ref: (dim_p, TH)      b2_ref: (1, dim_p)
    # o_ref:  (TM, dim_p)      acc_ref: (TM, dim_p) f32 scratch
    h_idx = pl.program_id(1)

    @pl.when(h_idx == 0)
    def _init():
        acc_ref[...] = jnp.zeros_like(acc_ref)

    x = x_ref[...]
    # First linear on this hidden slice. Contract on the torch "in" axis so the
    # weight keeps its native [out, in] layout (transposed-RHS matmul on MXU).
    h = lax.dot_general(
        x, w1_ref[...],
        dimension_numbers=(((1,), (1,)), ((), ())),
        preferred_element_type=jnp.float32,
    )
    h = jnp.maximum(h + b1_ref[...].astype(jnp.float32), 0.0)  # bias + ReLU in f32

    # Second linear, partial contribution of this hidden slice -> f32 accumulator.
    acc_ref[...] += lax.dot_general(
        h.astype(w2_ref.dtype), w2_ref[...],
        dimension_numbers=(((1,), (1,)), ((), ())),
        preferred_element_type=jnp.float32,
    )

    @pl.when(h_idx == pl.num_programs(1) - 1)
    def _finalize():
        o_ref[...] = (acc_ref[...] + b2_ref[...].astype(jnp.float32)).astype(o_ref.dtype)


def feed_forward(x, w1, b1, w2, b2, *, tile_m=256, tile_h=512, compute_dtype=None):
    """x: [..., dim]; w1: [hidden, dim]; b1: [hidden]; w2: [dim, hidden]; b2: [dim].

    Weight convention matches torch.nn.Linear (weight is [out, in]).
    Optionally cast matmul operands to `compute_dtype` (e.g. jnp.bfloat16) for
    v6e/v7x MXU peak; accumulation stays f32.
    """
    orig_shape = x.shape
    dim = x.shape[-1]
    hidden = w1.shape[0]
    x2d = x.reshape(-1, dim)
    M = x2d.shape[0]

    if compute_dtype is not None:
        x2d = x2d.astype(compute_dtype)
        w1 = w1.astype(compute_dtype)
        w2 = w2.astype(compute_dtype)

    # Lane-dense / tile-aligned padding.
    dim_p = _round_up(dim, 128)
    TM = min(tile_m, _round_up(M, 8))
    M_p = _round_up(M, TM)
    TH = min(tile_h, _round_up(hidden, 128))
    hid_p = _round_up(hidden, TH)

    x_p = jnp.pad(x2d, ((0, M_p - M), (0, dim_p - dim)))
    w1_p = jnp.pad(w1, ((0, hid_p - hidden), (0, dim_p - dim)))   # [hidden_p, dim_p]
    w2_p = jnp.pad(w2, ((0, dim_p - dim), (0, hid_p - hidden)))   # [dim_p, hidden_p]
    b1_p = jnp.pad(b1, (0, hid_p - hidden)).reshape(1, hid_p)
    b2_p = jnp.pad(b2, (0, dim_p - dim)).reshape(1, dim_p)

    out_dtype = x.dtype
    grid = (M_p // TM, hid_p // TH)

    # VMEM budget: double-buffered tiles + f32 accumulator (with headroom, capped).
    isz = x_p.dtype.itemsize
    tiles_bytes = isz * (TM * dim_p + TH * dim_p + TH + dim_p * TH + dim_p + TM * dim_p)
    needed = 2 * tiles_bytes + 4 * TM * dim_p
    vmem_limit = int(max(32 * 1024 * 1024, min(2 * needed, 64 * 1024 * 1024)))

    cost = pl.CostEstimate(
        flops=4 * M * dim * hidden,  # two matmuls: 2*M*dim*hidden each
        transcendentals=0,
        bytes_accessed=isz * (2 * M * dim + 2 * hidden * dim + hidden + dim),
    )

    out = pl.pallas_call(
        _ffn_kernel,
        out_shape=jax.ShapeDtypeStruct((M_p, dim_p), out_dtype),
        grid_spec=pltpu.PrefetchScalarGridSpec(
            num_scalar_prefetch=0,
            grid=grid,
            in_specs=[
                pl.BlockSpec((TM, dim_p), lambda i, h: (i, 0)),   # x row tile
                pl.BlockSpec((TH, dim_p), lambda i, h: (h, 0)),   # w1 [out,in] slice
                pl.BlockSpec((1, TH),     lambda i, h: (0, h)),   # b1 slice
                pl.BlockSpec((dim_p, TH), lambda i, h: (0, h)),   # w2 [out,in] slice
                pl.BlockSpec((1, dim_p),  lambda i, h: (0, 0)),   # b2 (resident)
            ],
            out_specs=pl.BlockSpec((TM, dim_p), lambda i, h: (i, 0)),
            scratch_shapes=[pltpu.VMEM((TM, dim_p), jnp.float32)],
        ),
        compiler_params=pltpu.CompilerParams(
            dimension_semantics=("parallel", "arbitrary"),
            vmem_limit_bytes=vmem_limit,
        ),
        cost_estimate=cost,
    )(x_p, w1_p, b1_p, w2_p, b2_p)

    return out[:M, :dim].reshape(orig_shape)


if __name__ == "__main__":
    batch, seq, dim, hidden_dim = 2, 8, 32, 64

    key = jax.random.PRNGKey(0)
    kx, kw1, kb1, kw2, kb2 = jax.random.split(key, 5)

    x = jax.random.normal(kx, (batch, seq, dim), dtype=jnp.float32)

    # Deterministic PyTorch-like init; weights are [out, in].
    bound1 = 1.0 / jnp.sqrt(dim)
    w1 = jax.random.uniform(kw1, (hidden_dim, dim), minval=-bound1, maxval=bound1,
                            dtype=jnp.float32)
    b1 = jax.random.uniform(kb1, (hidden_dim,), minval=-bound1, maxval=bound1,
                            dtype=jnp.float32)
    bound2 = 1.0 / jnp.sqrt(hidden_dim)
    w2 = jax.random.uniform(kw2, (dim, hidden_dim), minval=-bound2, maxval=bound2,
                            dtype=jnp.float32)
    b2 = jax.random.uniform(kb2, (dim,), minval=-bound2, maxval=bound2,
                            dtype=jnp.float32)

    ffn = jax.jit(feed_forward)
    out = jax.block_until_ready(ffn(x, w1, b1, w2, b2))

    # Reference check (same math as torch.nn.Linear chain).
    ref = jnp.maximum(x @ w1.T + b1, 0.0) @ w2.T + b2
    assert out.shape == x.shape
    assert jnp.allclose(out, ref, atol=1e-4, rtol=1e-4), "mismatch vs reference"

    print("KERNEL_OK")
</pallas_src>

<mosaic_0001>
module attributes {stable_mosaic.version = 11 : i64} {
  func.func @_ffn_kernel(%arg0: i32, %arg1: i32, %arg2: memref<16x128xf32, #tpu.memory_space<vmem>>, %arg3: memref<128x128xf32, #tpu.memory_space<vmem>>, %arg4: memref<1x128xf32, #tpu.memory_space<vmem>>, %arg5: memref<128x128xf32, #tpu.memory_space<vmem>>, %arg6: memref<1x128xf32, #tpu.memory_space<vmem>>, %arg7: memref<16x128xf32, #tpu.memory_space<vmem>>, %arg8: memref<16x128xf32, #tpu.memory_space<vmem>>) attributes {dimension_semantics = [#tpu.dimension_semantics<parallel>, #tpu.dimension_semantics<arbitrary>], iteration_bounds = array<i64: 1, 1>, scalar_prefetch = 0 : i64, scratch_operands = 1 : i64, tpu.core_type = #tpu.core_type<tc>, window_params = [{transform_indices = @transform_0, window_bounds = array<i64: 16, 128>}, {transform_indices = @transform_1, window_bounds = array<i64: 128, 128>}, {transform_indices = @transform_2, window_bounds = array<i64: 1, 128>}, {transform_indices = @transform_3, window_bounds = array<i64: 128, 128>}, {pipeline_mode = #tpu.pipeline_mode<synchronous>, transform_indices = @transform_4, window_bounds = array<i64: 1, 128>}, {transform_indices = @transform_5, window_bounds = array<i64: 16, 128>}]} {
    %c0_i32 = arith.constant 0 : i32
    %0 = arith.cmpi eq, %arg1, %c0_i32 : i32
    %1 = arith.extui %0 : i1 to i32
    %c0_i32_0 = arith.constant 0 : i32
    %2 = arith.cmpi ne, %1, %c0_i32_0 : i32
    scf.if %2 {
      %cst_16 = arith.constant 0.000000e+00 : f32
      %19 = vector.broadcast %cst_16 : f32 to vector<16x128xf32>
      %c0_17 = arith.constant 0 : index
      %c0_18 = arith.constant 0 : index
      %20 = vector.load %arg8[%c0_17, %c0_18] : memref<16x128xf32, #tpu.memory_space<vmem>>, vector<16x128xf32>
      tpu.vector_store %arg8[%c0_17, %c0_18], %19 {strides = array<i32>} : memref<16x128xf32, #tpu.memory_space<vmem>>, vector<16x128xf32>,
    } else {
    }
    %c0 = arith.constant 0 : index
    %c0_1 = arith.constant 0 : index
    %3 = vector.load %arg2[%c0, %c0_1] : memref<16x128xf32, #tpu.memory_space<vmem>>, vector<16x128xf32>
    %c0_2 = arith.constant 0 : index
    %c0_3 = arith.constant 0 : index
    %4 = vector.load %arg3[%c0_2, %c0_3] : memref<128x128xf32, #tpu.memory_space<vmem>>, vector<128x128xf32>
    %cst = arith.constant dense<0.000000e+00> : vector<16x128xf32>
    %5 = tpu.matmul %3, %4, %cst {dimension_numbers = #tpu.dot_dimension_numbers<[1], [1], [0], [0], [0, 0, 1, 0], [], []>} : vector<16x128xf32>, vector<128x128xf32>, vector<16x128xf32> -> vector<16x128xf32>
    %c0_4 = arith.constant 0 : index
    %c0_5 = arith.constant 0 : index
    %6 = vector.load %arg4[%c0_4, %c0_5] : memref<1x128xf32, #tpu.memory_space<vmem>>, vector<1x128xf32>
    %7 = vector.broadcast %6 : vector<1x128xf32> to vector<16x128xf32>
    %8 = arith.addf %5, %7 : vector<16x128xf32>
    %cst_6 = arith.constant 0.000000e+00 : f32
    %9 = vector.broadcast %cst_6 : f32 to vector<16x128xf32>
    %10 = arith.maximumf %8, %9 : vector<16x128xf32>
    %c0_7 = arith.constant 0 : index
    %c0_8 = arith.constant 0 : index
    %11 = vector.load %arg8[%c0_7, %c0_8] : memref<16x128xf32, #tpu.memory_space<vmem>>, vector<16x128xf32>
    %c0_9 = arith.constant 0 : index
    %c0_10 = arith.constant 0 : index
    %12 = vector.load %arg5[%c0_9, %c0_10] : memref<128x128xf32, #tpu.memory_space<vmem>>, vector<128x128xf32>
    %cst_11 = arith.constant dense<0.000000e+00> : vector<16x128xf32>
    %13 = tpu.matmul %10, %12, %cst_11 {dimension_numbers = #tpu.dot_dimension_numbers<[1], [1], [0], [0], [0, 0, 1, 0], [], []>} : vector<16x128xf32>, vector<128x128xf32>, vector<16x128xf32> -> vector<16x128xf32>
    %14 = arith.addf %11, %13 : vector<16x128xf32>
    %c0_12 = arith.constant 0 : index
    %c0_13 = arith.constant 0 : index
    %15 = vector.load %arg8[%c0_12, %c0_13] : memref<16x128xf32, #tpu.memory_space<vmem>>, vector<16x128xf32>
    tpu.vector_store %arg8[%c0_12, %c0_13], %14 {strides = array<i32>} : memref<16x128xf32, #tpu.memory_space<vmem>>, vector<16x128xf32>,
    %c0_i32_14 = arith.constant 0 : i32
    %16 = arith.cmpi eq, %arg1, %c0_i32_14 : i32
    %17 = arith.extui %16 : i1 to i32
    %c0_i32_15 = arith.constant 0 : i32
    %18 = arith.cmpi ne, %17, %c0_i32_15 : i32
    scf.if %18 {
      %c0_16 = arith.constant 0 : index
      %c0_17 = arith.constant 0 : index
      %19 = vector.load %arg8[%c0_16, %c0_17] : memref<16x128xf32, #tpu.memory_space<vmem>>, vector<16x128xf32>
      %c0_18 = arith.constant 0 : index
      %c0_19 = arith.constant 0 : index
      %20 = vector.load %arg6[%c0_18, %c0_19] : memref<1x128xf32, #tpu.memory_space<vmem>>, vector<1x128xf32>
      %21 = vector.broadcast %20 : vector<1x128xf32> to vector<16x128xf32>
      %22 = arith.addf %19, %21 : vector<16x128xf32>
      %c0_20 = arith.constant 0 : index
      %c0_21 = arith.constant 0 : index
      %23 = vector.load %arg7[%c0_20, %c0_21] : memref<16x128xf32, #tpu.memory_space<vmem>>, vector<16x128xf32>
      tpu.vector_store %arg7[%c0_20, %c0_21], %22 {strides = array<i32>} : memref<16x128xf32, #tpu.memory_space<vmem>>, vector<16x128xf32>,
    } else {
    }
    return
  }
  func.func @transform_0(%arg0: i32, %arg1: i32) -> (i32, i32) {
    %c0_i32 = arith.constant 0 : i32
    %c0_i32_0 = arith.constant 0 : i32
    return %arg0, %c0_i32 : i32, i32
  }
  func.func @transform_1(%arg0: i32, %arg1: i32) -> (i32, i32) {
    %c0_i32 = arith.constant 0 : i32
    %c0_i32_0 = arith.constant 0 : i32
    return %arg1, %c0_i32 : i32, i32
  }
  func.func @transform_2(%arg0: i32, %arg1: i32) -> (i32, i32) {
    %c0_i32 = arith.constant 0 : i32
    %c0_i32_0 = arith.constant 0 : i32
    return %c0_i32, %arg1 : i32, i32
  }
  func.func @transform_3(%arg0: i32, %arg1: i32) -> (i32, i32) {
    %c0_i32 = arith.constant 0 : i32
    %c0_i32_0 = arith.constant 0 : i32
    return %c0_i32, %arg1 : i32, i32
  }
  func.func @transform_4(%arg0: i32, %arg1: i32) -> (i32, i32) {
    %c0_i32 = arith.constant 0 : i32
    %c0_i32_0 = arith.constant 0 : i32
    %c0_i32_1 = arith.constant 0 : i32
    return %c0_i32, %c0_i32_0 : i32, i32
  }
  func.func @transform_5(%arg0: i32, %arg1: i32) -> (i32, i32) {
    %c0_i32 = arith.constant 0 : i32
    %c0_i32_0 = arith.constant 0 : i32
    return %arg0, %c0_i32 : i32, i32
  }
}

</mosaic_0001>

<bundles_post_ra>
// kernel: feed_forward.1
= control target key start
LH: loop header
LB: loop body
LE: loop exit
PB: predicated region body
PF: predicated region fallthrough
CT: control target
= control target key end

     0   :  { %s313_s1 = inlined_call_operand.vmem [shape: f32[128,128], index: 1, kind: input, shape index: {}]   ;;  %s314_s2 = inlined_call_operand.vmem [shape: f32[1,128], index: 2, kind: input, shape index: {}]   ;;  %s315_s3 = inlined_call_operand.vmem [shape: f32[128,128], index: 3, kind: input, shape index: {}]   ;;  %s316_s0 = inlined_call_operand.vmem [shape: f32[16,128], index: 0, kind: input, shape index: {}]   ;;  %s317_s4 = inlined_call_operand.vmem [shape: f32[1,128], index: 4, kind: input, shape index: {}]   ;;  %s318_s5 = inlined_call_operand.vmem [shape: f32[16,128], index: 5, kind: output, shape index: {}]  }
   0x1   :  { %v43_v0 = vld [vmem:[%s313_s1 + $0x78] sm:$0xff]  ;;  %v42_v1 = vld [vmem:[%s313_s1 + $0x70] sm:$0xff]  ;;  %v41_v2 = vld [vmem:[%s313_s1 + $0x68] sm:$0xff] }
   0x2   :  { %135 = vmatpush.xpose.msra.mxu2 %v43_v0  ;;  %48 = vmatpush.xpose.msra.mxu0 %v43_v0  ;;  %v40_v3 = vld [vmem:[%s313_s1 + $0x60] sm:$0xff]  ;;  %v39_v4 = vld [vmem:[%s313_s1 + $0x58] sm:$0xff]  ;;  %v38_v5 = vld [vmem:[%s313_s1 + $0x50] sm:$0xff] }
   0x3   :  { %v37_v6 = vld [vmem:[%s313_s1 + $0x48] sm:$0xff]  ;;  %v36_v7 = vld [vmem:[%s313_s1 + $0x40] sm:$0xff]  ;;  %v35_v8 = vld [vmem:[%s313_s1 + $0x38] sm:$0xff] }
   0x4   :  { %v90_v9 = vld [vmem:[%s315_s3 + $0x78] sm:$0xff]  ;;  %v34_v10 = vld [vmem:[%s313_s1 + $0x30] sm:$0xff]  ;;  %v33_v12 = vld [vmem:[%s313_s1 + $0x28] sm:$0xff] }
   0x5   :  { %151 = vmatpush.xpose.msra.mxu3 %v90_v9  ;;  %91 = vmatpush.xpose.msra.mxu1 %v90_v9  ;;  %v89_v11 = vld [vmem:[%s315_s3 + $0x70] sm:$0xff]  ;;  %v88_v13 = vld [vmem:[%s315_s3 + $0x68] sm:$0xff]  ;;  %v32_v14 = vld [vmem:[%s313_s1 + $0x20] sm:$0xff] }
   0x6   :  { %136 = vmatpush.xpose.msra.mxu2 %v42_v1  ;;  %49 = vmatpush.xpose.msra.mxu0 %v42_v1  ;;  %v87_v15 = vld [vmem:[%s315_s3 + $0x60] sm:$0xff]  ;;  %v31_v16 = vld [vmem:[%s313_s1 + $0x18] sm:$0xff]  ;;  %v30_v18 = vld [vmem:[%s313_s1 + $0x10] sm:$0xff] }
   0x7   :  { %v86_v17 = vld [vmem:[%s315_s3 + $0x58] sm:$0xff]  ;;  %v85_v19 = vld [vmem:[%s315_s3 + $0x50] sm:$0xff]  ;;  %v29_v20 = vld [vmem:[%s313_s1 + $0x8] sm:$0xff] }
   0x8   :  { %v84_v21 = vld [vmem:[%s315_s3 + $0x48] sm:$0xff]  ;;  %v28_v22 = vld [vmem:[%s313_s1] sm:$0xff]  ;;  %v82_v26 = vld [vmem:[%s315_s3 + $0x38] sm:$0xff] }
   0x9   :  { %152 = vmatpush.xpose.msra.mxu3 %v89_v11  ;;  %92 = vmatpush.xpose.msra.mxu1 %v89_v11  ;;  %v83_v23 = vld [vmem:[%s315_s3 + $0x40] sm:$0xff]  ;;  %v27_v24 = vld [vmem:[%s316_s0 + $0x8] sm:$0xff]  ;;  %v81_v27 = vld [vmem:[%s315_s3 + $0x30] sm:$0xff] }
   0xa   :  { %137 = vmatpush.xpose.msra.mxu2 %v41_v2  ;;  %50 = vmatpush.xpose.msra.mxu0 %v41_v2  ;;  %v26_v25 = vld [vmem:[%s316_s0] sm:$0xff]  ;;  %v80_v28 = vld [vmem:[%s315_s3 + $0x28] sm:$0xff]  ;;  %v78_v30 = vld [vmem:[%s315_s3 + $0x18] sm:$0xff] }
   0xb   :  { %v79_v29 = vld [vmem:[%s315_s3 + $0x20] sm:$0xff]  ;;  %v77_v31 = vld [vmem:[%s315_s3 + $0x10] sm:$0xff]  ;;  %v76_v32 = vld [vmem:[%s315_s3 + $0x8] sm:$0xff] }
   0xc   :  { %v75_v33 = vld [vmem:[%s315_s3] sm:$0xff] }
   0xd   :  { %153 = vmatpush.xpose.msra.mxu3 %v88_v13  ;;  %93 = vmatpush.xpose.msra.mxu1 %v88_v13  ;;  %v167_v34 = vld [vmem:[%s314_s2] ss:$0 sm:$0xff] }
   0xe   :  { %138 = vmatpush.xpose.msra.mxu2 %v40_v3  ;;  %51 = vmatpush.xpose.msra.mxu0 %v40_v3  ;;  %v168_v41 = vld [vmem:[%s317_s4] ss:$0 sm:$0xff] }
  0x11   :  { %154 = vmatpush.xpose.msra.mxu3 %v87_v15  ;;  %94 = vmatpush.xpose.msra.mxu1 %v87_v15 }
  0x12   :  { %139 = vmatpush.xpose.msra.mxu2 %v39_v4  ;;  %52 = vmatpush.xpose.msra.mxu0 %v39_v4 }
  0x15   :  { %155 = vmatpush.xpose.msra.mxu3 %v86_v17  ;;  %95 = vmatpush.xpose.msra.mxu1 %v86_v17 }
  0x16   :  { %140 = vmatpush.xpose.msra.mxu2 %v38_v5  ;;  %53 = vmatpush.xpose.msra.mxu0 %v38_v5 }
  0x19   :  { %156 = vmatpush.xpose.msra.mxu3 %v85_v19  ;;  %96 = vmatpush.xpose.msra.mxu1 %v85_v19 }
  0x1a   :  { %141 = vmatpush.xpose.msra.mxu2 %v37_v6  ;;  %54 = vmatpush.xpose.msra.mxu0 %v37_v6 }
  0x1d   :  { %157 = vmatpush.xpose.msra.mxu3 %v84_v21  ;;  %97 = vmatpush.xpose.msra.mxu1 %v84_v21 }
  0x1e   :  { %142 = vmatpush.xpose.msra.mxu2 %v36_v7  ;;  %55 = vmatpush.xpose.msra.mxu0 %v36_v7 }
  0x21   :  { %158 = vmatpush.xpose.msra.mxu3 %v83_v23  ;;  %98 = vmatpush.xpose.msra.mxu1 %v83_v23 }
  0x22   :  { %143 = vmatpush.xpose.msra.mxu2 %v35_v8  ;;  %56 = vmatpush.xpose.msra.mxu0 %v35_v8 }
  0x25   :  { %159 = vmatpush.xpose.msra.mxu3 %v82_v26  ;;  %99 = vmatpush.xpose.msra.mxu1 %v82_v26 }
  0x26   :  { %144 = vmatpush.xpose.msra.mxu2 %v34_v10  ;;  %57 = vmatpush.xpose.msra.mxu0 %v34_v10 }
  0x29   :  { %160 = vmatpush.xpose.msra.mxu3 %v81_v27  ;;  %100 = vmatpush.xpose.msra.mxu1 %v81_v27 }
  0x2a   :  { %145 = vmatpush.xpose.msra.mxu2 %v33_v12  ;;  %58 = vmatpush.xpose.msra.mxu0 %v33_v12 }
  0x2d   :  { %161 = vmatpush.xpose.msra.mxu3 %v80_v28  ;;  %101 = vmatpush.xpose.msra.mxu1 %v80_v28 }
  0x2e   :  { %146 = vmatpush.xpose.msra.mxu2 %v32_v14  ;;  %59 = vmatpush.xpose.msra.mxu0 %v32_v14 }
  0x31   :  { %162 = vmatpush.xpose.msra.mxu3 %v79_v29  ;;  %102 = vmatpush.xpose.msra.mxu1 %v79_v29 }
  0x32   :  { %147 = vmatpush.xpose.msra.mxu2 %v31_v16  ;;  %60 = vmatpush.xpose.msra.mxu0 %v31_v16 }
  0x35   :  { %163 = vmatpush.xpose.msra.mxu3 %v78_v30  ;;  %103 = vmatpush.xpose.msra.mxu1 %v78_v30 }
  0x36   :  { %148 = vmatpush.xpose.msra.mxu2 %v30_v18  ;;  %61 = vmatpush.xpose.msra.mxu0 %v30_v18 }
  0x39   :  { %164 = vmatpush.xpose.msra.mxu3 %v77_v31  ;;  %104 = vmatpush.xpose.msra.mxu1 %v77_v31 }
  0x3a   :  { %149 = vmatpush.xpose.msra.mxu2 %v29_v20  ;;  %62 = vmatpush.xpose.msra.mxu0 %v29_v20 }
  0x3d   :  { %165 = vmatpush.xpose.msra.mxu3 %v76_v32  ;;  %105 = vmatpush.xpose.msra.mxu1 %v76_v32 }
  0x3e   :  { %150 = vmatpush.xpose.msra.mxu2 %v28_v22  ;;  %63 = vmatpush.xpose.msra.mxu0 %v28_v22 }
  0x41   :  { %67 = vmatmul.f32.vlgmr.msra.gmra.mxu2 %v27_v24  ;;  %64 = vmatmul.f32.vlgmr.msra.gmra.mxu0 %v26_v25 }
  0x42   :  { %166 = vmatpush.xpose.msra.mxu3 %v75_v33  ;;  %106 = vmatpush.xpose.msra.mxu1 %v75_v33 }
  0xbe   :  { %v65_v35 = vpop.f32.mrf.mxu0 }
  0xbf   :  { %v66_v36 = vadd.f32 %v167_v34, %v65_v35 }
  0xc1   :  { %v71_v37 = vmax.f32 %v66_v36, 0.0 }
  0xc3   :  { %107 = vmatmul.f32.vlgmr.msra.gmra.mxu1 %v71_v37 }
  0xc4   :  { %v68_v38 = vpop.f32.mrf.mxu2 }
  0xc5   :  { %v69_v39 = vadd.f32 %v167_v34, %v68_v38 }
  0xc7   :  { %v72_v40 = vmax.f32 %v69_v39, 0.0 }
  0xc9   :  { %110 = vmatmul.f32.vlgmr.msra.gmra.mxu3 %v72_v40 }
 0x140   :  { %v108_v42 = vpop.f32.mrf.mxu1 }
 0x141   :  { %v127_v43 = vadd.f32 %v168_v41, %v108_v42 }
 0x143   :  { %129 = vst [vmem:[%s318_s5] sm:$0xff] %v127_v43 }
 0x14c   :  { %v111_v44 = vpop.f32.mrf.mxu3 }
 0x14d   :  { %v128_v45 = vadd.f32 %v168_v41, %v111_v44 }
 0x14f   :  { %130 = vst [vmem:[%s318_s5 + $0x8] sm:$0xff] %v128_v45 }

</bundles_post_ra>
